<compile_context>
chip_gen: v6e
topology: v6e:2x2x1
jax: 0.10.0
libtpu: 0.0.40
codegen_flags: <defaults>
</compile_context>

<pallas_src>
import jax
import jax.numpy as jnp
from jax.experimental import pallas as pl
from jax.experimental.pallas import tpu as pltpu


def _shuffle_kernel(x_ref, o_ref):
    # x_ref: (1, g, c_tile, HW)   o_ref: (1, c_tile, g*HW)
    # out[0, a, j*HW:(j+1)*HW] = in[0, j, a, :];  g tiny -> static unroll.
    g = x_ref.shape[1]
    hw = x_ref.shape[3]
    for j in range(g):
        o_ref[0, :, pl.ds(j * hw, hw)] = x_ref[0, j, :, :]


def _vmem_budgets():
    """(pipelined-footprint budget, vmem_limit_bytes) derived from the chip."""
    try:
        cap = int(pltpu.get_tpu_info().vmem_capacity_bytes)
    except Exception:
        cap = 64 * 1024 * 1024  # conservative (v7x-sized) fallback
    # 2 buffers x (in_tile + out_tile) must fit with headroom.
    footprint_budget = min((cap * 3) // 4, 96 * 1024 * 1024)
    vmem_limit = min(cap, footprint_budget + (16 << 20))
    return footprint_budget, vmem_limit


def _pick_c_tile(cpg, g, hw, itemsize, footprint_budget, n_batch):
    """Channel tile: dtype-aware sublane alignment, sized to the VMEM budget,
    kept small enough that the grid has work for both v7x TensorCores."""
    # Per channel-of-group cost of the pipelined footprint:
    #   2 buffers x (input tile + output tile) = 4 * g * hw * itemsize * c_tile
    per_c = 4 * g * hw * itemsize
    align = max(8, (8 * 4) // itemsize)  # 8 f32, 16 bf16, 32 int8/fp8

    max_ct = footprint_budget // per_c
    if max_ct >= cpg:
        c_tile = cpg  # full dim -> always a legal block shape
    else:
        c_tile = (max_ct // align) * align
        if c_tile < align:
            # Budget too tight for an aligned tile: prefer layout legality
            # (alignment or full-dim); the budget already has headroom.
            c_tile = align if align < cpg else cpg
        c_tile = min(c_tile, cpg)

    # Keep >= ~4 grid steps (2 TCs on v7x) when the channel count allows it.
    if cpg > align:
        min_steps = 4
        need = -(-min_steps // max(1, n_batch))          # tiles per batch
        if -(-cpg // c_tile) < need:
            ct2 = -(-cpg // need)
            ct2 = -(-ct2 // align) * align               # round up to align
            c_tile = min(c_tile, max(align, ct2))
    return c_tile


def channel_shuffle(x, groups):
    """Pallas implementation of:
       x.view(N, g, C//g, H, W).permute(0, 2, 1, 3, 4).reshape(N, C, H, W)
    """
    N, C, H, W = x.shape
    g = int(groups)
    assert C % g == 0, "channels must be divisible by groups"
    cpg = C // g
    HW = H * W

    # Lane-dense views: shuffle = the (g, cpg) <-> (cpg, g) transpose, with the
    # output flattened to (cpg, g*HW) so stores are full-lane and unmasked.
    x4 = x.reshape(N, g, cpg, HW)

    itemsize = jnp.dtype(x.dtype).itemsize
    footprint_budget, vmem_limit = _vmem_budgets()
    c_tile = _pick_c_tile(cpg, g, HW, itemsize, footprint_budget, N)
    grid = (N, pl.cdiv(cpg, c_tile))

    out3 = pl.pallas_call(
        _shuffle_kernel,
        out_shape=jax.ShapeDtypeStruct((N, cpg, g * HW), x.dtype),
        grid=grid,
        in_specs=[
            pl.BlockSpec((1, g, c_tile, HW), lambda n, i: (n, 0, i, 0)),
        ],
        out_specs=pl.BlockSpec((1, c_tile, g * HW), lambda n, i: (n, i, 0)),
        compiler_params=pltpu.CompilerParams(
            dimension_semantics=("parallel", "parallel"),
            vmem_limit_bytes=int(vmem_limit),
        ),
    )(x4)

    # (N, cpg, g*HW) -> (N, C, H, W) is a free reshape of a contiguous array.
    return out3.reshape(N, C, H, W)


def channel_shuffle_ref(x, groups):
    N, C, H, W = x.shape
    g = groups
    return (
        x.reshape(N, g, C // g, H, W)
        .transpose(0, 2, 1, 3, 4)
        .reshape(N, C, H, W)
    )


if __name__ == "__main__":
    key = jax.random.PRNGKey(0)

    # Primary shape (matches the module's typical small test size).
    N, C, H, W = 2, 4, 16, 16
    groups = 2
    x = jax.random.normal(key, (N, C, H, W), dtype=jnp.float32)
    out = jax.block_until_ready(channel_shuffle(x, groups))
    ref = channel_shuffle_ref(x, groups)
    assert out.shape == ref.shape and out.dtype == ref.dtype
    assert jnp.allclose(out, ref), "Pallas channel shuffle mismatch vs reference"

    # Secondary small shape exercising g=3 and a different spatial size.
    key2 = jax.random.PRNGKey(1)
    x2 = jax.random.normal(key2, (1, 24, 8, 8), dtype=jnp.float32)
    out2 = jax.block_until_ready(channel_shuffle(x2, 3))
    ref2 = channel_shuffle_ref(x2, 3)
    assert jnp.allclose(out2, ref2), "Pallas channel shuffle mismatch (g=3)"

    print("KERNEL_OK")
</pallas_src>

<mosaic_0001>
module attributes {stable_mosaic.version = 11 : i64} {
  func.func @_shuffle_kernel(%arg0: i32, %arg1: i32, %arg2: memref<1x2x2x256xf32, #tpu.memory_space<vmem>>, %arg3: memref<1x2x512xf32, #tpu.memory_space<vmem>>) attributes {dimension_semantics = [#tpu.dimension_semantics<parallel>, #tpu.dimension_semantics<parallel>], iteration_bounds = array<i64: 2, 1>, scalar_prefetch = 0 : i64, scratch_operands = 0 : i64, tpu.core_type = #tpu.core_type<tc>, window_params = [{transform_indices = @transform_0, window_bounds = array<i64: 1, 2, 2, 256>}, {transform_indices = @transform_1, window_bounds = array<i64: 1, 2, 512>}]} {
    %c0 = arith.constant 0 : index
    %c0_0 = arith.constant 0 : index
    %c0_1 = arith.constant 0 : index
    %c0_2 = arith.constant 0 : index
    %0 = vector.load %arg2[%c0, %c0_0, %c0_1, %c0_2] : memref<1x2x2x256xf32, #tpu.memory_space<vmem>>, vector<1x1x2x256xf32>
    %1 = vector.shape_cast %0 : vector<1x1x2x256xf32> to vector<2x256xf32>
    %c0_3 = arith.constant 0 : index
    %c0_4 = arith.constant 0 : index
    %c0_5 = arith.constant 0 : index
    %2 = vector.load %arg3[%c0_3, %c0_4, %c0_5] : memref<1x2x512xf32, #tpu.memory_space<vmem>>, vector<1x2x256xf32>
    %3 = vector.shape_cast %2 : vector<1x2x256xf32> to vector<2x256xf32>
    %4 = vector.shape_cast %1 : vector<2x256xf32> to vector<1x2x256xf32>
    tpu.vector_store %arg3[%c0_3, %c0_4, %c0_5], %4 {strides = array<i32>} : memref<1x2x512xf32, #tpu.memory_space<vmem>>, vector<1x2x256xf32>,
    %c0_6 = arith.constant 0 : index
    %c1 = arith.constant 1 : index
    %c0_7 = arith.constant 0 : index
    %c0_8 = arith.constant 0 : index
    %5 = vector.load %arg2[%c0_6, %c1, %c0_7, %c0_8] : memref<1x2x2x256xf32, #tpu.memory_space<vmem>>, vector<1x1x2x256xf32>
    %6 = vector.shape_cast %5 : vector<1x1x2x256xf32> to vector<2x256xf32>
    %c0_9 = arith.constant 0 : index
    %c0_10 = arith.constant 0 : index
    %c256 = arith.constant 256 : index
    %7 = vector.load %arg3[%c0_9, %c0_10, %c256] : memref<1x2x512xf32, #tpu.memory_space<vmem>>, vector<1x2x256xf32>
    %8 = vector.shape_cast %7 : vector<1x2x256xf32> to vector<2x256xf32>
    %9 = vector.shape_cast %6 : vector<2x256xf32> to vector<1x2x256xf32>
    tpu.vector_store %arg3[%c0_9, %c0_10, %c256], %9 {strides = array<i32>} : memref<1x2x512xf32, #tpu.memory_space<vmem>>, vector<1x2x256xf32>,
    return
  }
  func.func @transform_0(%arg0: i32, %arg1: i32) -> (i32, i32, i32, i32) {
    %c0_i32 = arith.constant 0 : i32
    %c0_i32_0 = arith.constant 0 : i32
    %c0_i32_1 = arith.constant 0 : i32
    return %arg0, %c0_i32, %arg1, %c0_i32_0 : i32, i32, i32, i32
  }
  func.func @transform_1(%arg0: i32, %arg1: i32) -> (i32, i32, i32) {
    %c0_i32 = arith.constant 0 : i32
    %c0_i32_0 = arith.constant 0 : i32
    return %arg0, %arg1, %c0_i32 : i32, i32, i32
  }
}

</mosaic_0001>

<bundles_post_ra>
// kernel: tpu_custom_call.1
= control target key start
LH: loop header
LB: loop body
LE: loop exit
PB: predicated region body
PF: predicated region fallthrough
CT: control target
= control target key end

     0   :  { %6 = vsyncpa [#allocation3], 0  ;;  %s603_s0 = inlined_call_operand.hbm [shape: f32[2,2,2,256], index: 0, kind: input, shape index: {}]   ;;  %s604_s1 = inlined_call_operand.hbm [shape: f32[2,2,512], index: 1, kind: output, shape index: {}]  }
   0x1   :  { %8 = vsyncpa [#allocation3 + $0x1], 0 }
   0x2   :  { %9 = vsyncpa [#allocation4], 0 }
   0x3   :  { %11 = vsyncpa [#allocation4 + $0x1], 0  ;;  %s465_s6 = smov 0   ;;  %s467_s7 = smov 0  }
   0x4   :  { %s469_s8 = smov 0   ;;  %s471_s9 = smov 0  }
   0x5   :  { %s473_s10 = smov 0   ;;  %s475_s11 = smov 0  }
   0x6 LB: > { %s259_s12 = sadd.s32 4294967295, %s449_s11   ;;  %s260_s13 = sadd.s32 4294967294, %s449_s11   ;;  %s449_s11 = sphi %s475_s11, %s17_s11   ;;  %s445_s10 = sphi %s473_s10, %s615_s10   ;;  %s441_s9 = sphi %s471_s9, %s614_s9   ;;  %s437_s8 = sphi %s469_s8, %s613_s8   ;;  %s433_s7 = sphi %s467_s7, %s612_s7   ;;  %s429_s6 = sphi %s465_s6, %s611_s6  }
   0x7   : > { %s29_s14 = sadd.s32 1, %s445_s10  ;;  %s38_s15 = sadd.s32 1, %s437_s8 }
   0x8   : > { %p31_p0 = scmp.ge.s32.totalorder %s29_s14, 2  ;;  %p45_p1 = scmp.ne.s32.totalorder %s437_s8, %s433_s7 }
   0x9   : > { %p46_p2 = scmp.eq.s32.totalorder %s449_s11, 0  ;;  %p51_p3 = scmp.ne.s32.totalorder %s433_s7, %s429_s6 }
   0xa   : > { %s617_s14 = smov (%p31_p0, %s29_s14), 0  ;;  %p52_p5 = scmp.eq.s32.totalorder %s259_s12, 0 }
   0xb   : > { %p506_p4 = por %p46_p2, %p45_p1  ;;  %s33_s17 = ssub.s32 %s445_s10, %s617_s14 }
   0xc   : > { %p77_p6 = scmp.eq.s32.totalorder %s259_s12, 1  ;;  %p36_p7 = scmp.eq.s32.totalorder %s33_s17, 0 }
   0xd   : > { %p512_p8 = por %p52_p5, %p51_p3  ;;  %p83_p10 = scmp.eq.s32.totalorder %s260_s13, 1 }
   0xe   : > { %p516_p9 = por %p77_p6, %p45_p1  ;;  %p289_p13 = scmp.lt.s32.totalorder %s449_s11, 2 }
   0xf   : > { %s521_s20 = scalar_select %p36_p7, %s437_s8, %s38_s15  }
  0x10   : > { %p523_p11 = por %p83_p10, %p51_p3  ;;  %s103_s22 = sand.u32 1, %s437_s8  }
  0x11   : > { %s263_s23 = sshll.u32 %s103_s22, 3  ;;  %s275_s24 = sshll.u32 %s445_s10, 7 }
  0x12   : > { %s115_s27 = scalar_lea.hbm %s603_s0, %s275_s24  ;;  %s107_s28 = scalar_lea.vmem [#allocation2], %s263_s23 }
  0x13   : > { %s116_s29 = sshll.u32 %s107_s28, 4  ;;  %p536_p0 = pnand %p289_p13, %p506_p4  ;;  %s117_s29 = int_to_ptr.vmem [resolvable:$true] %s116_s29 }
  0x14   : > { %p266_p1 = scmp.ge.s32.totalorder %s449_s11, 1  ;;  %s104_s2 = scalar_lea.sflag [#allocation3], %s103_s22 }
  0x15   : > { %p343_p2 = pneg %p536_p0  ;;  %s354_s3 = scalar_lea.vmem %s117_s29, 128 }
  0x16   : > { %p355_p3 = scmp.ne.s32.totalorder %s117_s29, %s354_s3  ;;  %s451_s4 = smov [#allocation2]  }
  0x17   : > { %s359_s5 = sshll.u32 %s451_s4, 4  ;;  %s360_s5 = int_to_ptr.vmem [resolvable:$false] %s359_s5 }
  0x18   : > { %p357_p5 = pnand %p355_p3, %p343_p2  ;;  %s361_s12 = scalar_lea.vmem %s360_s5, 256 }
  0x19   : > { %p362_p7 = scmp.lt.s32.totalorder %s117_s29, %s360_s5  ;;  %p363_p10 = scmp.lt.s32.totalorder %s361_s12, %s354_s3 }
  0x1a   : > { %p358_p6 = pneg %p357_p5 }
  0x1b   : > { %p364_p12 = por %p363_p10, %p362_p7 }
  0x1d   : > { %p365_p4 = pnand %p364_p12, %p358_p6 }
  0x1f   : > { %368 = shalt.err (!%p365_p4)
}
  0x20   : > { %s452_s13 = smov 64   ;;  %s453_s15 = smov 4  }
  0x21   : > { %284 = dma.hbm_to_vmem [thread:$0]  (!%p536_p0), %s115_s27, 128, %s117_s29, %s104_s2, %s452_s13, %s452_s13, %s453_s15  }
  0x22   : > { %p124_p13 = scmp.lt.s32.totalorder %s449_s11, 3 }
  0x24   : > { %p125_p2 = pnand %p266_p1, %p124_p13 }
  0x25   : > { %s549_s16 = sand.u32 (!%p125_p2), 1, %s433_s7  }
  0x26   : > { %128 = sbr.rel (%p125_p2) target bundleno = 68 (0x44), region = 24  ;;  %s267_s17 = sshll.u32 (!%p125_p2), %s549_s16, 3 }
  0x27   : > { %s131_s22 = scalar_lea.sflag (!%p125_p2), [#allocation3], %s549_s16  ;;  %s134_s23 = scalar_lea.vmem (!%p125_p2), [#allocation2], %s267_s17 }
  0x2b   : > { %420 = dma.done.wait (%p512_p8), %s131_s22, 128  }
  0x2c   : > { %422 = vsyncadd (%p512_p8), %s131_s22, 4294967168  ;;  %s152_s24 = scalar_lea.vmem [#allocation5], %s267_s17  ;;  %s276_s26 = sshll.u32 %s441_s9, 7  ;;  %v153_v0 = vld [vmem:[%s134_s23] sm:$0xff]  }
  0x2d   : > { %s175_s25 = sshll.u32 %s152_s24, 4  ;;  %s173_s29 = scalar_lea.hbm %s604_s1, %s276_s26  ;;  %154 = vst [vmem:[%s152_s24] sm:$0xff] %v153_v0   ;;  %s558_s25 = int_to_ptr.vmem [resolvable:$true] %s175_s25 }
  0x2e   : > { %s159_s30 = scalar_lea.sflag [#allocation4], %s549_s16  ;;  %s369_s18 = scalar_lea.vmem %s558_s25, 128 }
  0x2f   : > { %p370_p8 = scmp.ne.s32.totalorder %s558_s25, %s369_s18  ;;  %s454_s2 = smov [#allocation5]  }
  0x30   : > { %s373_s3 = sshll.u32 %s454_s2, 4  ;;  %s374_s3 = int_to_ptr.vmem [resolvable:$false] %s373_s3 }
  0x31   : > { %p371_p12 = pnand %p370_p8, %p516_p9  ;;  %s375_s9 = scalar_lea.vmem %s374_s3, 256 }
  0x32   : > { %p376_p1 = scmp.lt.s32.totalorder %s558_s25, %s374_s3  ;;  %p377_p3 = scmp.lt.s32.totalorder %s375_s9, %s369_s18 }
  0x33   : > { %p372_p0 = pneg %p371_p12 }
  0x34   : > { %p378_p5 = por %p377_p3, %p376_p1 }
  0x36   : > { %p379_p6 = pnand %p378_p5, %p372_p0 }
  0x38   : > { %382 = shalt.err (!%p379_p6)
}
  0x39   : > { %s383_s4 = scalar_lea.hbm %s173_s29, 128  ;;  %s387_s13 = scalar_lea.hbm %s604_s1, 256 }
  0x3a   : > { %p384_p7 = scmp.ne.s32.totalorder %s173_s29, %s383_s4  ;;  %p388_p13 = scmp.lt.s32.totalorder %s173_s29, %s604_s1 }
  0x3b   : > { %p389_p2 = scmp.lt.s32.totalorder %s387_s13, %s383_s4 }
  0x3c   : > { %p385_p10 = pnand %p384_p7, %p516_p9 }
  0x3d   : > { %p390_p8 = por %p389_p2, %p388_p13 }
  0x3e   : > { %p386_p4 = pneg %p385_p10 }
  0x40   : > { %p391_p12 = pnand %p390_p8, %p386_p4 }
  0x42   : > { %394 = shalt.err (!%p391_p12)
}
  0x43   : > { %279 = dma.vmem_to_hbm [thread:$0]  (%p516_p9), %s558_s25, 128, %s173_s29, %s159_s30  }
  0x44 PF: > { %s187_s17 = sand.u32 1, %s429_s6   ;;  %p610_p0 = scmp.ge.s32.totalorder %s449_s11, 2 }
  0x45   : > { %s188_s22 = scalar_lea.sflag [#allocation4], %s187_s17 }
  0x46   : > { %p286_p1 = pnand %p610_p0, %p523_p11 }
  0x48   : > { %p287_p3 = pneg %p286_p1 }
  0x4a   : > { %424 = dma.done.wait (%p287_p3), %s188_s22, 128  }
  0x4b   : > { %426 = vsyncadd (%p287_p3), %s188_s22, 4294967168  ;;  %s17_s11 = sadd.s32 1, %s449_s11   ;;  %s611_s6 = smov %s433_s7 }
  0x4c   : > { %p14_p5 = scmp.ge.s32.totalorder %s17_s11, 4   ;;  %s612_s7 = smov %s437_s8 }
  0x4d   : > { %s613_s8 = smov %s521_s20  ;;  %s614_s9 = smov %s445_s10 }
  0x4e   : > { %s615_s10 = smov %s617_s14  ;;  %16 = sbr.rel (!%p14_p5) target bundleno = 6 (0x6), region = 70 }
  0x53   :  { %193 = vsyncpa [#allocation3], 1 }
  0x54   :  { %195 = vsyncpa [#allocation3 + $0x1], 1 }
  0x55   :  { %196 = vsyncpa [#allocation4], 1 }
  0x56   :  { %198 = vsyncpa [#allocation4 + $0x1], 1 }

</bundles_post_ra>
